<compile_context>
chip_gen: v5e
topology: v5e:2x2
jax: 0.10.0
libtpu: 0.0.40
codegen_flags: <defaults>
</compile_context>

<pallas_src>
import math
from functools import partial

import jax
import jax.numpy as jnp
from jax.experimental import pallas as pl
from jax.experimental.pallas import tpu as pltpu

INITIAL_STATE = 6      # x features
LIFTED_STATE = 30      # lifted dimension
HIDDEN = 30            # hidden width
CONTROL = 3            # u features (K in_size = lifted + 3)


def _round_up(n, m):
    return ((n + m - 1) // m) * m


def _koopman_kernel(
    x_ref, u_ref,
    e0_ref, e1_ref, e2_ref,          # encoder weights (transposed: out x in)
    a_ref, bu_ref,                   # folded en_w3@K_x@de_w0 and K_u@de_w0 (transposed)
    d1_ref, d2_ref, d3_ref,          # remaining decoder weights (transposed)
    out_ref,
    *, chunk,
):
    f32 = jnp.float32
    cdt = e0_ref.dtype               # compute dtype (f32 or bf16); MXU accumulates in f32
    tb = x_ref.shape[-1]
    n_chunks = tb // chunk

    def mm(w_ref, v):
        return jnp.dot(w_ref[...], v, preferred_element_type=f32)

    def run_chunk(off):
        x = x_ref[:, pl.ds(off, chunk)]          # (6,  chunk) feature-major
        u = u_ref[:, pl.ds(off, chunk)]          # (3,  chunk)

        # ---- encoder (ReLU layers) ----
        h = jnp.maximum(mm(e0_ref, x), 0.0).astype(cdt)   # (30, chunk)
        h = jnp.maximum(mm(e1_ref, h), 0.0).astype(cdt)
        h = jnp.maximum(mm(e2_ref, h), 0.0).astype(cdt)

        # ---- fused [encoder output layer] @ [Koopman K] @ [decoder input layer] ----
        # Exact fold: no nonlinearity between those three linear maps.
        d = jnp.maximum(mm(a_ref, h) + mm(bu_ref, u), 0.0).astype(cdt)

        # ---- decoder tail ----
        d = jnp.maximum(mm(d1_ref, d), 0.0).astype(cdt)
        d = jnp.maximum(mm(d2_ref, d), 0.0).astype(cdt)
        y = mm(d3_ref, d)                                  # (6, chunk) f32
        out_ref[:, pl.ds(off, chunk)] = jax.nn.sigmoid(y).astype(out_ref.dtype)

    # Statically unrolled lane-chunk loop (equivalent to lax.fori_loop(unroll=True)
    # with static, 128-aligned offsets): each chunk ends with its output store, so
    # live activations stay at ~(30, chunk) and large batch tiles never spill vregs,
    # while the big, well-amortized DMA tile is kept.
    for c in range(n_chunks):
        run_chunk(c * chunk)


def prepare_kernel_params(p, dtype=jnp.float32):
    """Fold activation-free linear maps (in f32) and transpose to (out, in).

    Call once, outside the per-step path; the returned tuple is what
    `koopman_forward` consumes. Use dtype=bf16 on v6e/v7x, f32 on v5e.
    """
    A = p["en_w3"] @ p["k_x"] @ p["de_w0"]   # (30, 30)
    Bu = p["k_u"] @ p["de_w0"]               # (3, 30)
    ws = (
        p["en_w0"].T, p["en_w1"].T, p["en_w2"].T,   # (30,6), (30,30), (30,30)
        A.T, Bu.T,                                  # (30,30), (30,3)
        p["de_w1"].T, p["de_w2"].T, p["de_w3"].T,   # (30,30), (30,30), (6,30)
    )
    return tuple(w.astype(dtype) for w in ws)


@partial(jax.jit, static_argnames=("tb", "chunk", "feature_major_out"))
def koopman_forward(x, u, kernel_weights, *, tb=1024, chunk=256,
                    feature_major_out=False):
    """x: (B, 6), u: (B, 3) -> (B, 6) (or (6, B) if feature_major_out)."""
    B = x.shape[0]
    cdt = kernel_weights[0].dtype

    # ---- batch tiling (tb multiple of 128) ----
    tb = max(128, (int(tb) // 128) * 128)
    B128 = _round_up(B, 128)
    tb = min(tb, B128)
    if B128 >= 2 * 128:
        # Guarantee >= 2 grid steps so the "parallel" batch axis can actually
        # shard across both TensorCores on v7x (no effect on v5e/v6e's single TC).
        tb = min(tb, _round_up(B128 // 2, 128))
    Bp = _round_up(B, tb)
    n_tiles = Bp // tb

    # ---- inner lane-chunk: multiple of 128 that divides tb ----
    chunk = max(128, (int(chunk) // 128) * 128)
    chunk = min(chunk, tb)
    chunk = math.gcd(tb // 128, chunk // 128) * 128

    # Feature-major operands. Under this single jit the transpose + tail pad +
    # dtype cast fuse into one copy per operand (a single extra HBM pass each);
    # only the tail up to the tile multiple is padded, and padded columns are
    # independent and sliced away below.
    x_fm = jnp.pad(x.astype(cdt).T, ((0, 0), (0, Bp - B)))
    u_fm = jnp.pad(u.astype(cdt).T, ((0, 0), (0, Bp - B)))

    # Weights: full blocks with constant index_maps -> DMA'd once, resident in
    # VMEM across all grid steps. (pipeline_mode=pl.Buffered(1) would trim the
    # unused second buffer; negligible at ~20 KB, so omitted.)
    w_specs = [pl.BlockSpec(w.shape, lambda i: (0, 0)) for w in kernel_weights]

    itemsize = jnp.dtype(cdt).itemsize
    weight_bytes = sum(int(w.size) * w.dtype.itemsize for w in kernel_weights)
    flops = 2 * Bp * (
        INITIAL_STATE * HIDDEN          # e0
        + 2 * HIDDEN * HIDDEN           # e1, e2
        + HIDDEN * HIDDEN               # folded A
        + CONTROL * HIDDEN              # folded Bu
        + 2 * HIDDEN * HIDDEN           # d1, d2
        + HIDDEN * INITIAL_STATE        # d3
    )
    bytes_accessed = (Bp * (INITIAL_STATE + CONTROL) * itemsize
                      + Bp * INITIAL_STATE * 4
                      + weight_bytes)

    out_fm = pl.pallas_call(
        partial(_koopman_kernel, chunk=chunk),
        out_shape=jax.ShapeDtypeStruct((INITIAL_STATE, Bp), jnp.float32),
        grid=(n_tiles,),
        in_specs=[
            pl.BlockSpec((INITIAL_STATE, tb), lambda i: (0, i)),
            pl.BlockSpec((CONTROL, tb), lambda i: (0, i)),
        ] + w_specs,
        out_specs=pl.BlockSpec((INITIAL_STATE, tb), lambda i: (0, i)),
        compiler_params=pltpu.CompilerParams(
            dimension_semantics=("parallel",),
        ),
        cost_estimate=pl.CostEstimate(
            flops=flops,
            transcendentals=Bp * INITIAL_STATE,   # sigmoid exp
            bytes_accessed=bytes_accessed,
        ),
    )(x_fm, u_fm, *kernel_weights)

    if feature_major_out:
        return out_fm[:, :B]          # (6, B): skips the final output transpose pass
    return out_fm[:, :B].T            # (B, 6): matches the PyTorch module


def init_params(key):
    """Deterministic synthetic weights. Stored as (in, out) = PyTorch weight.T."""
    ks = jax.random.split(key, 9)

    def w(k, in_f, out_f):
        bound = 1.0 / jnp.sqrt(jnp.float32(in_f))
        return jax.random.uniform(k, (in_f, out_f), jnp.float32, -bound, bound)

    k_full = w(ks[4], LIFTED_STATE + CONTROL, LIFTED_STATE)  # (33, 30)
    return {
        # encoder: 6->30, 30->30, 30->30, 30->30
        "en_w0": w(ks[0], INITIAL_STATE, HIDDEN),
        "en_w1": w(ks[1], HIDDEN, HIDDEN),
        "en_w2": w(ks[2], HIDDEN, HIDDEN),
        "en_w3": w(ks[3], HIDDEN, LIFTED_STATE),
        # Koopman matrix split along its input (33 = 30 + 3)
        "k_x": k_full[:LIFTED_STATE, :],
        "k_u": k_full[LIFTED_STATE:, :],
        # decoder: 30->30, 30->30, 30->30, 30->6
        "de_w0": w(ks[5], LIFTED_STATE, HIDDEN),
        "de_w1": w(ks[6], HIDDEN, HIDDEN),
        "de_w2": w(ks[7], HIDDEN, HIDDEN),
        "de_w3": w(ks[8], HIDDEN, INITIAL_STATE),
    }


def koopman_reference(x, u, p):
    """Unfused pure-JAX reference, identical to the (bias-free) PyTorch module."""
    relu = lambda a: jnp.maximum(a, 0.0)
    h = relu(x @ p["en_w0"])
    h = relu(h @ p["en_w1"])
    h = relu(h @ p["en_w2"])
    h = h @ p["en_w3"]
    z = jnp.concatenate([h, u], axis=1) @ jnp.concatenate([p["k_x"], p["k_u"]], axis=0)
    d = relu(z @ p["de_w0"])
    d = relu(d @ p["de_w1"])
    d = relu(d @ p["de_w2"])
    return jax.nn.sigmoid(d @ p["de_w3"])


if __name__ == "__main__":
    key = jax.random.PRNGKey(0)
    k_p, k_x, k_u = jax.random.split(key, 3)

    # B = 600 exercises: tail padding (600 -> 768), a 2-step batch grid
    # (v7x megacore sharding) and a 3-chunk inner lane loop.
    B = 600
    params = init_params(k_p)
    x = jax.random.normal(k_x, (B, INITIAL_STATE), jnp.float32)
    u = jax.random.normal(k_u, (B, CONTROL), jnp.float32)

    ref = koopman_reference(x, u, params)

    # f32 path (v5e-friendly; exact up to the fp reassociation of the fold).
    ws_f32 = prepare_kernel_params(params, jnp.float32)
    out_f32 = jax.block_until_ready(koopman_forward(x, u, ws_f32))
    assert out_f32.shape == (B, INITIAL_STATE)
    assert jnp.allclose(out_f32, ref, atol=1e-4, rtol=1e-4), "f32 mismatch vs reference"

    # bf16 path (v6e/v7x: bf16-native MXU, ~3x fewer MXU passes, f32 accumulation).
    ws_bf16 = prepare_kernel_params(params, jnp.bfloat16)
    out_bf16 = jax.block_until_ready(koopman_forward(x, u, ws_bf16))
    assert out_bf16.shape == (B, INITIAL_STATE)
    assert jnp.allclose(out_bf16, ref, atol=3e-2, rtol=3e-2), "bf16 mismatch vs reference"

    print("KERNEL_OK")
</pallas_src>

<mosaic_0001>
module attributes {stable_mosaic.version = 11 : i64} {
  func.func @_koopman_kernel(%arg0: i32, %arg1: memref<6x384xf32, #tpu.memory_space<vmem>>, %arg2: memref<3x384xf32, #tpu.memory_space<vmem>>, %arg3: memref<30x6xf32, #tpu.memory_space<vmem>>, %arg4: memref<30x30xf32, #tpu.memory_space<vmem>>, %arg5: memref<30x30xf32, #tpu.memory_space<vmem>>, %arg6: memref<30x30xf32, #tpu.memory_space<vmem>>, %arg7: memref<30x3xf32, #tpu.memory_space<vmem>>, %arg8: memref<30x30xf32, #tpu.memory_space<vmem>>, %arg9: memref<30x30xf32, #tpu.memory_space<vmem>>, %arg10: memref<6x30xf32, #tpu.memory_space<vmem>>, %arg11: memref<6x384xf32, #tpu.memory_space<vmem>>) attributes {dimension_semantics = [#tpu.dimension_semantics<parallel>], iteration_bounds = array<i64: 2>, scalar_prefetch = 0 : i64, scratch_operands = 0 : i64, tpu.core_type = #tpu.core_type<tc>, window_params = [{transform_indices = @transform_0, window_bounds = array<i64: 6, 384>}, {transform_indices = @transform_1, window_bounds = array<i64: 3, 384>}, {pipeline_mode = #tpu.pipeline_mode<synchronous>, transform_indices = @transform_2, window_bounds = array<i64: 30, 6>}, {pipeline_mode = #tpu.pipeline_mode<synchronous>, transform_indices = @transform_3, window_bounds = array<i64: 30, 30>}, {pipeline_mode = #tpu.pipeline_mode<synchronous>, transform_indices = @transform_4, window_bounds = array<i64: 30, 30>}, {pipeline_mode = #tpu.pipeline_mode<synchronous>, transform_indices = @transform_5, window_bounds = array<i64: 30, 30>}, {pipeline_mode = #tpu.pipeline_mode<synchronous>, transform_indices = @transform_6, window_bounds = array<i64: 30, 3>}, {pipeline_mode = #tpu.pipeline_mode<synchronous>, transform_indices = @transform_7, window_bounds = array<i64: 30, 30>}, {pipeline_mode = #tpu.pipeline_mode<synchronous>, transform_indices = @transform_8, window_bounds = array<i64: 30, 30>}, {pipeline_mode = #tpu.pipeline_mode<synchronous>, transform_indices = @transform_9, window_bounds = array<i64: 6, 30>}, {transform_indices = @transform_10, window_bounds = array<i64: 6, 384>}]} {
    %c0 = arith.constant 0 : index
    %c0_0 = arith.constant 0 : index
    %0 = vector.load %arg1[%c0, %c0_0] : memref<6x384xf32, #tpu.memory_space<vmem>>, vector<6x128xf32>
    %c0_1 = arith.constant 0 : index
    %c0_2 = arith.constant 0 : index
    %1 = vector.load %arg2[%c0_1, %c0_2] : memref<3x384xf32, #tpu.memory_space<vmem>>, vector<3x128xf32>
    %c0_3 = arith.constant 0 : index
    %c0_4 = arith.constant 0 : index
    %2 = vector.load %arg3[%c0_3, %c0_4] : memref<30x6xf32, #tpu.memory_space<vmem>>, vector<30x6xf32>
    %cst = arith.constant dense<0.000000e+00> : vector<30x128xf32>
    %3 = tpu.matmul %2, %0, %cst {dimension_numbers = #tpu.dot_dimension_numbers<[1], [0], [0], [1], [0, 0, 1, 1], [], []>} : vector<30x6xf32>, vector<6x128xf32>, vector<30x128xf32> -> vector<30x128xf32>
    %cst_5 = arith.constant 0.000000e+00 : f32
    %4 = vector.broadcast %cst_5 : f32 to vector<30x128xf32>
    %5 = arith.maximumf %3, %4 : vector<30x128xf32>
    %c0_6 = arith.constant 0 : index
    %c0_7 = arith.constant 0 : index
    %6 = vector.load %arg4[%c0_6, %c0_7] : memref<30x30xf32, #tpu.memory_space<vmem>>, vector<30x30xf32>
    %cst_8 = arith.constant dense<0.000000e+00> : vector<30x128xf32>
    %7 = tpu.matmul %6, %5, %cst_8 {dimension_numbers = #tpu.dot_dimension_numbers<[1], [0], [0], [1], [0, 0, 1, 1], [], []>} : vector<30x30xf32>, vector<30x128xf32>, vector<30x128xf32> -> vector<30x128xf32>
    %cst_9 = arith.constant 0.000000e+00 : f32
    %8 = vector.broadcast %cst_9 : f32 to vector<30x128xf32>
    %9 = arith.maximumf %7, %8 : vector<30x128xf32>
    %c0_10 = arith.constant 0 : index
    %c0_11 = arith.constant 0 : index
    %10 = vector.load %arg5[%c0_10, %c0_11] : memref<30x30xf32, #tpu.memory_space<vmem>>, vector<30x30xf32>
    %cst_12 = arith.constant dense<0.000000e+00> : vector<30x128xf32>
    %11 = tpu.matmul %10, %9, %cst_12 {dimension_numbers = #tpu.dot_dimension_numbers<[1], [0], [0], [1], [0, 0, 1, 1], [], []>} : vector<30x30xf32>, vector<30x128xf32>, vector<30x128xf32> -> vector<30x128xf32>
    %cst_13 = arith.constant 0.000000e+00 : f32
    %12 = vector.broadcast %cst_13 : f32 to vector<30x128xf32>
    %13 = arith.maximumf %11, %12 : vector<30x128xf32>
    %c0_14 = arith.constant 0 : index
    %c0_15 = arith.constant 0 : index
    %14 = vector.load %arg6[%c0_14, %c0_15] : memref<30x30xf32, #tpu.memory_space<vmem>>, vector<30x30xf32>
    %cst_16 = arith.constant dense<0.000000e+00> : vector<30x128xf32>
    %15 = tpu.matmul %14, %13, %cst_16 {dimension_numbers = #tpu.dot_dimension_numbers<[1], [0], [0], [1], [0, 0, 1, 1], [], []>} : vector<30x30xf32>, vector<30x128xf32>, vector<30x128xf32> -> vector<30x128xf32>
    %c0_17 = arith.constant 0 : index
    %c0_18 = arith.constant 0 : index
    %16 = vector.load %arg7[%c0_17, %c0_18] : memref<30x3xf32, #tpu.memory_space<vmem>>, vector<30x3xf32>
    %cst_19 = arith.constant dense<0.000000e+00> : vector<30x128xf32>
    %17 = tpu.matmul %16, %1, %cst_19 {dimension_numbers = #tpu.dot_dimension_numbers<[1], [0], [0], [1], [0, 0, 1, 1], [], []>} : vector<30x3xf32>, vector<3x128xf32>, vector<30x128xf32> -> vector<30x128xf32>
    %18 = arith.addf %15, %17 : vector<30x128xf32>
    %cst_20 = arith.constant 0.000000e+00 : f32
    %19 = vector.broadcast %cst_20 : f32 to vector<30x128xf32>
    %20 = arith.maximumf %18, %19 : vector<30x128xf32>
    %c0_21 = arith.constant 0 : index
    %c0_22 = arith.constant 0 : index
    %21 = vector.load %arg8[%c0_21, %c0_22] : memref<30x30xf32, #tpu.memory_space<vmem>>, vector<30x30xf32>
    %cst_23 = arith.constant dense<0.000000e+00> : vector<30x128xf32>
    %22 = tpu.matmul %21, %20, %cst_23 {dimension_numbers = #tpu.dot_dimension_numbers<[1], [0], [0], [1], [0, 0, 1, 1], [], []>} : vector<30x30xf32>, vector<30x128xf32>, vector<30x128xf32> -> vector<30x128xf32>
    %cst_24 = arith.constant 0.000000e+00 : f32
    %23 = vector.broadcast %cst_24 : f32 to vector<30x128xf32>
    %24 = arith.maximumf %22, %23 : vector<30x128xf32>
    %c0_25 = arith.constant 0 : index
    %c0_26 = arith.constant 0 : index
    %25 = vector.load %arg9[%c0_25, %c0_26] : memref<30x30xf32, #tpu.memory_space<vmem>>, vector<30x30xf32>
    %cst_27 = arith.constant dense<0.000000e+00> : vector<30x128xf32>
    %26 = tpu.matmul %25, %24, %cst_27 {dimension_numbers = #tpu.dot_dimension_numbers<[1], [0], [0], [1], [0, 0, 1, 1], [], []>} : vector<30x30xf32>, vector<30x128xf32>, vector<30x128xf32> -> vector<30x128xf32>
    %cst_28 = arith.constant 0.000000e+00 : f32
    %27 = vector.broadcast %cst_28 : f32 to vector<30x128xf32>
    %28 = arith.maximumf %26, %27 : vector<30x128xf32>
    %c0_29 = arith.constant 0 : index
    %c0_30 = arith.constant 0 : index
    %29 = vector.load %arg10[%c0_29, %c0_30] : memref<6x30xf32, #tpu.memory_space<vmem>>, vector<6x30xf32>
    %cst_31 = arith.constant dense<0.000000e+00> : vector<6x128xf32>
    %30 = tpu.matmul %29, %28, %cst_31 {dimension_numbers = #tpu.dot_dimension_numbers<[1], [0], [0], [1], [0, 0, 1, 1], [], []>} : vector<6x30xf32>, vector<30x128xf32>, vector<6x128xf32> -> vector<6x128xf32>
    %31 = arith.negf %30 : vector<6x128xf32>
    %32 = math.exp %31 : vector<6x128xf32>
    %cst_32 = arith.constant 1.000000e+00 : f32
    %33 = vector.broadcast %cst_32 : f32 to vector<6x128xf32>
    %34 = arith.addf %33, %32 : vector<6x128xf32>
    %35 = arith.divf %33, %34 : vector<6x128xf32>
    %c0_33 = arith.constant 0 : index
    %c0_34 = arith.constant 0 : index
    %36 = vector.load %arg11[%c0_33, %c0_34] : memref<6x384xf32, #tpu.memory_space<vmem>>, vector<6x128xf32>
    tpu.vector_store %arg11[%c0_33, %c0_34], %35 {strides = array<i32>} : memref<6x384xf32, #tpu.memory_space<vmem>>, vector<6x128xf32>,
    %c0_35 = arith.constant 0 : index
    %c128 = arith.constant 128 : index
    %37 = vector.load %arg1[%c0_35, %c128] : memref<6x384xf32, #tpu.memory_space<vmem>>, vector<6x128xf32>
    %c0_36 = arith.constant 0 : index
    %c128_37 = arith.constant 128 : index
    %38 = vector.load %arg2[%c0_36, %c128_37] : memref<3x384xf32, #tpu.memory_space<vmem>>, vector<3x128xf32>
    %c0_38 = arith.constant 0 : index
    %c0_39 = arith.constant 0 : index
    %39 = vector.load %arg3[%c0_38, %c0_39] : memref<30x6xf32, #tpu.memory_space<vmem>>, vector<30x6xf32>
    %cst_40 = arith.constant dense<0.000000e+00> : vector<30x128xf32>
    %40 = tpu.matmul %39, %37, %cst_40 {dimension_numbers = #tpu.dot_dimension_numbers<[1], [0], [0], [1], [0, 0, 1, 1], [], []>} : vector<30x6xf32>, vector<6x128xf32>, vector<30x128xf32> -> vector<30x128xf32>
    %cst_41 = arith.constant 0.000000e+00 : f32
    %41 = vector.broadcast %cst_41 : f32 to vector<30x128xf32>
    %42 = arith.maximumf %40, %41 : vector<30x128xf32>
    %c0_42 = arith.constant 0 : index
    %c0_43 = arith.constant 0 : index
    %43 = vector.load %arg4[%c0_42, %c0_43] : memref<30x30xf32, #tpu.memory_space<vmem>>, vector<30x30xf32>
    %cst_44 = arith.constant dense<0.000000e+00> : vector<30x128xf32>
    %44 = tpu.matmul %43, %42, %cst_44 {dimension_numbers = #tpu.dot_dimension_numbers<[1], [0], [0], [1], [0, 0, 1, 1], [], []>} : vector<30x30xf32>, vector<30x128xf32>, vector<30x128xf32> -> vector<30x128xf32>
    %cst_45 = arith.constant 0.000000e+00 : f32
    %45 = vector.broadcast %cst_45 : f32 to vector<30x128xf32>
    %46 = arith.maximumf %44, %45 : vector<30x128xf32>
    %c0_46 = arith.constant 0 : index
    %c0_47 = arith.constant 0 : index
    %47 = vector.load %arg5[%c0_46, %c0_47] : memref<30x30xf32, #tpu.memory_space<vmem>>, vector<30x30xf32>
    %cst_48 = arith.constant dense<0.000000e+00> : vector<30x128xf32>
    %48 = tpu.matmul %47, %46, %cst_48 {dimension_numbers = #tpu.dot_dimension_numbers<[1], [0], [0], [1], [0, 0, 1, 1], [], []>} : vector<30x30xf32>, vector<30x128xf32>, vector<30x128xf32> -> vector<30x128xf32>
    %cst_49 = arith.constant 0.000000e+00 : f32
    %49 = vector.broadcast %cst_49 : f32 to vector<30x128xf32>
    %50 = arith.maximumf %48, %49 : vector<30x128xf32>
    %c0_50 = arith.constant 0 : index
    %c0_51 = arith.constant 0 : index
    %51 = vector.load %arg6[%c0_50, %c0_51] : memref<30x30xf32, #tpu.memory_space<vmem>>, vector<30x30xf32>
    %cst_52 = arith.constant dense<0.000000e+00> : vector<30x128xf32>
    %52 = tpu.matmul %51, %50, %cst_52 {dimension_numbers = #tpu.dot_dimension_numbers<[1], [0], [0], [1], [0, 0, 1, 1], [], []>} : vector<30x30xf32>, vector<30x128xf32>, vector<30x128xf32> -> vector<30x128xf32>
    %c0_53 = arith.constant 0 : index
    %c0_54 = arith.constant 0 : index
    %53 = vector.load %arg7[%c0_53, %c0_54] : memref<30x3xf32, #tpu.memory_space<vmem>>, vector<30x3xf32>
    %cst_55 = arith.constant dense<0.000000e+00> : vector<30x128xf32>
    %54 = tpu.matmul %53, %38, %cst_55 {dimension_numbers = #tpu.dot_dimension_numbers<[1], [0], [0], [1], [0, 0, 1, 1], [], []>} : vector<30x3xf32>, vector<3x128xf32>, vector<30x128xf32> -> vector<30x128xf32>
    %55 = arith.addf %52, %54 : vector<30x128xf32>
    %cst_56 = arith.constant 0.000000e+00 : f32
    %56 = vector.broadcast %cst_56 : f32 to vector<30x128xf32>
    %57 = arith.maximumf %55, %56 : vector<30x128xf32>
    %c0_57 = arith.constant 0 : index
    %c0_58 = arith.constant 0 : index
    %58 = vector.load %arg8[%c0_57, %c0_58] : memref<30x30xf32, #tpu.memory_space<vmem>>, vector<30x30xf32>
    %cst_59 = arith.constant dense<0.000000e+00> : vector<30x128xf32>
    %59 = tpu.matmul %58, %57, %cst_59 {dimension_numbers = #tpu.dot_dimension_numbers<[1], [0], [0], [1], [0, 0, 1, 1], [], []>} : vector<30x30xf32>, vector<30x128xf32>, vector<30x128xf32> -> vector<30x128xf32>
    %cst_60 = arith.constant 0.000000e+00 : f32
    %60 = vector.broadcast %cst_60 : f32 to vector<30x128xf32>
    %61 = arith.maximumf %59, %60 : vector<30x128xf32>
    %c0_61 = arith.constant 0 : index
    %c0_62 = arith.constant 0 : index
    %62 = vector.load %arg9[%c0_61, %c0_62] : memref<30x30xf32, #tpu.memory_space<vmem>>, vector<30x30xf32>
    %cst_63 = arith.constant dense<0.000000e+00> : vector<30x128xf32>
    %63 = tpu.matmul %62, %61, %cst_63 {dimension_numbers = #tpu.dot_dimension_numbers<[1], [0], [0], [1], [0, 0, 1, 1], [], []>} : vector<30x30xf32>, vector<30x128xf32>, vector<30x128xf32> -> vector<30x128xf32>
    %cst_64 = arith.constant 0.000000e+00 : f32
    %64 = vector.broadcast %cst_64 : f32 to vector<30x128xf32>
    %65 = arith.maximumf %63, %64 : vector<30x128xf32>
    %c0_65 = arith.constant 0 : index
    %c0_66 = arith.constant 0 : index
    %66 = vector.load %arg10[%c0_65, %c0_66] : memref<6x30xf32, #tpu.memory_space<vmem>>, vector<6x30xf32>
    %cst_67 = arith.constant dense<0.000000e+00> : vector<6x128xf32>
    %67 = tpu.matmul %66, %65, %cst_67 {dimension_numbers = #tpu.dot_dimension_numbers<[1], [0], [0], [1], [0, 0, 1, 1], [], []>} : vector<6x30xf32>, vector<30x128xf32>, vector<6x128xf32> -> vector<6x128xf32>
    %68 = arith.negf %67 : vector<6x128xf32>
    %69 = math.exp %68 : vector<6x128xf32>
    %cst_68 = arith.constant 1.000000e+00 : f32
    %70 = vector.broadcast %cst_68 : f32 to vector<6x128xf32>
    %71 = arith.addf %70, %69 : vector<6x128xf32>
    %72 = arith.divf %70, %71 : vector<6x128xf32>
    %c0_69 = arith.constant 0 : index
    %c128_70 = arith.constant 128 : index
    %73 = vector.load %arg11[%c0_69, %c128_70] : memref<6x384xf32, #tpu.memory_space<vmem>>, vector<6x128xf32>
    tpu.vector_store %arg11[%c0_69, %c128_70], %72 {strides = array<i32>} : memref<6x384xf32, #tpu.memory_space<vmem>>, vector<6x128xf32>,
    %c0_71 = arith.constant 0 : index
    %c256 = arith.constant 256 : index
    %74 = vector.load %arg1[%c0_71, %c256] : memref<6x384xf32, #tpu.memory_space<vmem>>, vector<6x128xf32>
    %c0_72 = arith.constant 0 : index
    %c256_73 = arith.constant 256 : index
    %75 = vector.load %arg2[%c0_72, %c256_73] : memref<3x384xf32, #tpu.memory_space<vmem>>, vector<3x128xf32>
    %c0_74 = arith.constant 0 : index
    %c0_75 = arith.constant 0 : index
    %76 = vector.load %arg3[%c0_74, %c0_75] : memref<30x6xf32, #tpu.memory_space<vmem>>, vector<30x6xf32>
    %cst_76 = arith.constant dense<0.000000e+00> : vector<30x128xf32>
    %77 = tpu.matmul %76, %74, %cst_76 {dimension_numbers = #tpu.dot_dimension_numbers<[1], [0], [0], [1], [0, 0, 1, 1], [], []>} : vector<30x6xf32>, vector<6x128xf32>, vector<30x128xf32> -> vector<30x128xf32>
    %cst_77 = arith.constant 0.000000e+00 : f32
    %78 = vector.broadcast %cst_77 : f32 to vector<30x128xf32>
    %79 = arith.maximumf %77, %78 : vector<30x128xf32>
    %c0_78 = arith.constant 0 : index
    %c0_79 = arith.constant 0 : index
    %80 = vector.load %arg4[%c0_78, %c0_79] : memref<30x30xf32, #tpu.memory_space<vmem>>, vector<30x30xf32>
    %cst_80 = arith.constant dense<0.000000e+00> : vector<30x128xf32>
    %81 = tpu.matmul %80, %79, %cst_80 {dimension_numbers = #tpu.dot_dimension_numbers<[1], [0], [0], [1], [0, 0, 1, 1], [], []>} : vector<30x30xf32>, vector<30x128xf32>, vector<30x128xf32> -> vector<30x128xf32>
    %cst_81 = arith.constant 0.000000e+00 : f32
    %82 = vector.broadcast %cst_81 : f32 to vector<30x128xf32>
    %83 = arith.maximumf %81, %82 : vector<30x128xf32>
    %c0_82 = arith.constant 0 : index
    %c0_83 = arith.constant 0 : index
    %84 = vector.load %arg5[%c0_82, %c0_83] : memref<30x30xf32, #tpu.memory_space<vmem>>, vector<30x30xf32>
    %cst_84 = arith.constant dense<0.000000e+00> : vector<30x128xf32>
    %85 = tpu.matmul %84, %83, %cst_84 {dimension_numbers = #tpu.dot_dimension_numbers<[1], [0], [0], [1], [0, 0, 1, 1], [], []>} : vector<30x30xf32>, vector<30x128xf32>, vector<30x128xf32> -> vector<30x128xf32>
    %cst_85 = arith.constant 0.000000e+00 : f32
    %86 = vector.broadcast %cst_85 : f32 to vector<30x128xf32>
    %87 = arith.maximumf %85, %86 : vector<30x128xf32>
    %c0_86 = arith.constant 0 : index
    %c0_87 = arith.constant 0 : index
    %88 = vector.load %arg6[%c0_86, %c0_87] : memref<30x30xf32, #tpu.memory_space<vmem>>, vector<30x30xf32>
    %cst_88 = arith.constant dense<0.000000e+00> : vector<30x128xf32>
    %89 = tpu.matmul %88, %87, %cst_88 {dimension_numbers = #tpu.dot_dimension_numbers<[1], [0], [0], [1], [0, 0, 1, 1], [], []>} : vector<30x30xf32>, vector<30x128xf32>, vector<30x128xf32> -> vector<30x128xf32>
    %c0_89 = arith.constant 0 : index
    %c0_90 = arith.constant 0 : index
    %90 = vector.load %arg7[%c0_89, %c0_90] : memref<30x3xf32, #tpu.memory_space<vmem>>, vector<30x3xf32>
    %cst_91 = arith.constant dense<0.000000e+00> : vector<30x128xf32>
    %91 = tpu.matmul %90, %75, %cst_91 {dimension_numbers = #tpu.dot_dimension_numbers<[1], [0], [0], [1], [0, 0, 1, 1], [], []>} : vector<30x3xf32>, vector<3x128xf32>, vector<30x128xf32> -> vector<30x128xf32>
    %92 = arith.addf %89, %91 : vector<30x128xf32>
    %cst_92 = arith.constant 0.000000e+00 : f32
    %93 = vector.broadcast %cst_92 : f32 to vector<30x128xf32>
    %94 = arith.maximumf %92, %93 : vector<30x128xf32>
    %c0_93 = arith.constant 0 : index
    %c0_94 = arith.constant 0 : index
    %95 = vector.load %arg8[%c0_93, %c0_94] : memref<30x30xf32, #tpu.memory_space<vmem>>, vector<30x30xf32>
    %cst_95 = arith.constant dense<0.000000e+00> : vector<30x128xf32>
    %96 = tpu.matmul %95, %94, %cst_95 {dimension_numbers = #tpu.dot_dimension_numbers<[1], [0], [0], [1], [0, 0, 1, 1], [], []>} : vector<30x30xf32>, vector<30x128xf32>, vector<30x128xf32> -> vector<30x128xf32>
    %cst_96 = arith.constant 0.000000e+00 : f32
    %97 = vector.broadcast %cst_96 : f32 to vector<30x128xf32>
    %98 = arith.maximumf %96, %97 : vector<30x128xf32>
    %c0_97 = arith.constant 0 : index
    %c0_98 = arith.constant 0 : index
    %99 = vector.load %arg9[%c0_97, %c0_98] : memref<30x30xf32, #tpu.memory_space<vmem>>, vector<30x30xf32>
    %cst_99 = arith.constant dense<0.000000e+00> : vector<30x128xf32>
    %100 = tpu.matmul %99, %98, %cst_99 {dimension_numbers = #tpu.dot_dimension_numbers<[1], [0], [0], [1], [0, 0, 1, 1], [], []>} : vector<30x30xf32>, vector<30x128xf32>, vector<30x128xf32> -> vector<30x128xf32>
    %cst_100 = arith.constant 0.000000e+00 : f32
    %101 = vector.broadcast %cst_100 : f32 to vector<30x128xf32>
    %102 = arith.maximumf %100, %101 : vector<30x128xf32>
    %c0_101 = arith.constant 0 : index
    %c0_102 = arith.constant 0 : index
    %103 = vector.load %arg10[%c0_101, %c0_102] : memref<6x30xf32, #tpu.memory_space<vmem>>, vector<6x30xf32>
    %cst_103 = arith.constant dense<0.000000e+00> : vector<6x128xf32>
    %104 = tpu.matmul %103, %102, %cst_103 {dimension_numbers = #tpu.dot_dimension_numbers<[1], [0], [0], [1], [0, 0, 1, 1], [], []>} : vector<6x30xf32>, vector<30x128xf32>, vector<6x128xf32> -> vector<6x128xf32>
    %105 = arith.negf %104 : vector<6x128xf32>
    %106 = math.exp %105 : vector<6x128xf32>
    %cst_104 = arith.constant 1.000000e+00 : f32
    %107 = vector.broadcast %cst_104 : f32 to vector<6x128xf32>
    %108 = arith.addf %107, %106 : vector<6x128xf32>
    %109 = arith.divf %107, %108 : vector<6x128xf32>
    %c0_105 = arith.constant 0 : index
    %c256_106 = arith.constant 256 : index
    %110 = vector.load %arg11[%c0_105, %c256_106] : memref<6x384xf32, #tpu.memory_space<vmem>>, vector<6x128xf32>
    tpu.vector_store %arg11[%c0_105, %c256_106], %109 {strides = array<i32>} : memref<6x384xf32, #tpu.memory_space<vmem>>, vector<6x128xf32>,
    return
  }
  func.func @transform_0(%arg0: i32) -> (i32, i32) {
    %c0_i32 = arith.constant 0 : i32
    %c0_i32_0 = arith.constant 0 : i32
    return %c0_i32, %arg0 : i32, i32
  }
  func.func @transform_1(%arg0: i32) -> (i32, i32) {
    %c0_i32 = arith.constant 0 : i32
    %c0_i32_0 = arith.constant 0 : i32
    return %c0_i32, %arg0 : i32, i32
  }
  func.func @transform_2(%arg0: i32) -> (i32, i32) {
    %c0_i32 = arith.constant 0 : i32
    %c0_i32_0 = arith.constant 0 : i32
    %c0_i32_1 = arith.constant 0 : i32
    return %c0_i32, %c0_i32_0 : i32, i32
  }
  func.func @transform_3(%arg0: i32) -> (i32, i32) {
    %c0_i32 = arith.constant 0 : i32
    %c0_i32_0 = arith.constant 0 : i32
    %c0_i32_1 = arith.constant 0 : i32
    return %c0_i32, %c0_i32_0 : i32, i32
  }
  func.func @transform_4(%arg0: i32) -> (i32, i32) {
    %c0_i32 = arith.constant 0 : i32
    %c0_i32_0 = arith.constant 0 : i32
    %c0_i32_1 = arith.constant 0 : i32
    return %c0_i32, %c0_i32_0 : i32, i32
  }
  func.func @transform_5(%arg0: i32) -> (i32, i32) {
    %c0_i32 = arith.constant 0 : i32
    %c0_i32_0 = arith.constant 0 : i32
    %c0_i32_1 = arith.constant 0 : i32
    return %c0_i32, %c0_i32_0 : i32, i32
  }
  func.func @transform_6(%arg0: i32) -> (i32, i32) {
    %c0_i32 = arith.constant 0 : i32
    %c0_i32_0 = arith.constant 0 : i32
    %c0_i32_1 = arith.constant 0 : i32
    return %c0_i32, %c0_i32_0 : i32, i32
  }
  func.func @transform_7(%arg0: i32) -> (i32, i32) {
    %c0_i32 = arith.constant 0 : i32
    %c0_i32_0 = arith.constant 0 : i32
    %c0_i32_1 = arith.constant 0 : i32
    return %c0_i32, %c0_i32_0 : i32, i32
  }
  func.func @transform_8(%arg0: i32) -> (i32, i32) {
    %c0_i32 = arith.constant 0 : i32
    %c0_i32_0 = arith.constant 0 : i32
    %c0_i32_1 = arith.constant 0 : i32
    return %c0_i32, %c0_i32_0 : i32, i32
  }
  func.func @transform_9(%arg0: i32) -> (i32, i32) {
    %c0_i32 = arith.constant 0 : i32
    %c0_i32_0 = arith.constant 0 : i32
    %c0_i32_1 = arith.constant 0 : i32
    return %c0_i32, %c0_i32_0 : i32, i32
  }
  func.func @transform_10(%arg0: i32) -> (i32, i32) {
    %c0_i32 = arith.constant 0 : i32
    %c0_i32_0 = arith.constant 0 : i32
    return %c0_i32, %arg0 : i32, i32
  }
}

</mosaic_0001>

<bundles_post_ra>
// kernel: koopman_forward.1
= control target key start
LH: loop header
LB: loop body
LE: loop exit
PB: predicated region body
PF: predicated region fallthrough
CT: control target
= control target key end

     0   :  { %s1894_s13 = smov 0   ;;  %s2290_s0 = inlined_call_operand.vmem [shape: f32[6,768], index: 0, kind: input, shape index: {}]   ;;  %s2291_s1 = inlined_call_operand.vmem [shape: f32[3,768], index: 1, kind: input, shape index: {}]   ;;  %s2292_s2 = inlined_call_operand.vmem [shape: f32[30,6], index: 2, kind: input, shape index: {}]   ;;  %s2293_s3 = inlined_call_operand.vmem [shape: f32[30,30], index: 3, kind: input, shape index: {}]   ;;  %s2294_s4 = inlined_call_operand.vmem [shape: f32[30,30], index: 4, kind: input, shape index: {}]   ;;  %s2295_s5 = inlined_call_operand.vmem [shape: f32[30,30], index: 5, kind: input, shape index: {}]   ;;  %s2296_s6 = inlined_call_operand.vmem [shape: f32[30,3], index: 6, kind: input, shape index: {}]   ;;  %s2297_s7 = inlined_call_operand.vmem [shape: f32[30,30], index: 7, kind: input, shape index: {}]   ;;  %s2298_s8 = inlined_call_operand.vmem [shape: f32[30,30], index: 8, kind: input, shape index: {}]   ;;  %s2299_s9 = inlined_call_operand.vmem [shape: f32[6,30], index: 9, kind: input, shape index: {}]   ;;  %s2300_s10 = inlined_call_operand.vmem [shape: f32[6,768], index: 10, kind: output, shape index: {}]  }
   0x1 LB: > { %s1685_s14 = sadd.s32 4294967295, %s1837_s13   ;;  %p1689_p0 = scmp.ge.s32.totalorder %s1837_s13, 1  ;;  %s1837_s13 = sphi %s1894_s13, %s20_s13  }
   0x2   : > { %p324_p1 = scmp.lt.s32.totalorder %s1837_s13, 3 }
   0x4   : > { %p325_p2 = pnand %p1689_p0, %p324_p1 }
   0x5   : > { %s367_s15 = smul.u32 (!%p325_p2), 3, %s1685_s14 }
   0x6   : > { %328 = sbr.rel (%p325_p2) target bundleno = 3091 (0xc13), region = 60 }
   0x7   : > { %p368_p3 = scmp.lt.s32.totalorder (!%p325_p2), %s367_s15, 5 }
   0xb   : > { %s2302_s15 = smov (!%p368_p3, %s367_s15), 5  ;;  %vm404_vm0 = vcmask 1045504   ;;  %v390_v0 = vld [vmem:[%s2292_s2 + $0x18] sm:$0x3f]  ;;  %vm391_vm1 = vcmask 48128   ;;  %v1918_v1 = vld [vmem:[%s2292_s2] sm:$0xff] }
   0xc   : > { %s1690_s16 = sshll.u32 %s2302_s15, 3  ;;  %v1926_v3 = vld [vmem:[%s2292_s2 + $0x10] sm:$0xff]  ;;  %v1937_v4 = vld [vmem:[%s2292_s2 + $0x8] sm:$0xff]  ;;  %v1945_v13 = vld [vmem:[%s2293_s3] sm:$0xff]  ;;  %vm445_vm2 = vcmask 244736   ;;  %s1691_s28 = sshll.u32 %s2302_s15, 2 }
   0xd   : > { %s1910_s19 = scalar_lea.vmem %s2290_s0, %s1690_s16  ;;  %v1952_v14 = vld [vmem:[%s2293_s3 + $0x8] sm:$0xff]  ;;  %v1959_v15 = vld [vmem:[%s2293_s3 + $0x10] sm:$0xff]  ;;  %v444_v16 = vld [vmem:[%s2293_s3 + $0x18] sm:$0x3f]  ;;  %s1997_s11 = scalar_lea.vmem %s2291_s1, %s1691_s28  ;;  %vm567_vm3 = vcmask 1042432   ;;  %vm554_vm4 = vcmask 23552  }
   0xe   : > { %v385_v2 = vld [vmem:[%s1910_s19] sm:$0x3f]  ;;  %v1978_v26 = vld [vmem:[%s2294_s4 + $0x8] sm:$0xff]  ;;  %v1985_v27 = vld [vmem:[%s2294_s4 + $0x10] sm:$0xff]  ;;  %s2126_s24 = scalar_lea.vmem %s2300_s10, %s1690_s16 }
   0xf   : > { %1810 = vmatpush.msk.msra.mxu3 %vm404_vm0, %v385_v2  ;;  %1693 = vmatpush.msk.msra.mxu0 %vm404_vm0, %v385_v2  ;;  %v1971_v25 = vld [vmem:[%s2294_s4] sm:$0xff]  ;;  %v497_v28 = vld [vmem:[%s2294_s4 + $0x18] sm:$0x3f]  ;;  %v2011_v32 = vld [vmem:[%s2296_s6 + $0x8] sm:$0xff] }
  0x10   : > { %1697 = vmatmul.msk.f32.vlgmr.msra.gmra.mxu3 %vm391_vm1, %v390_v0  ;;  %1694 = vmatmul.msk.f32.vlgmr.msra.gmra.mxu0 %vm391_vm1, %v1918_v1  ;;  %v386_v29 = vld [vmem:[%s1997_s11] sm:$0x7]  ;;  %v2018_v34 = vld [vmem:[%s2296_s6 + $0x10] sm:$0xff]  ;;  %v553_v36 = vld [vmem:[%s2296_s6 + $0x18] sm:$0x3f] }
  0x11   : > { %1809 = vmatpush.msk.msra.mxu1 %vm404_vm0, %v385_v2  ;;  %1708 = vmatpush.msk.msrb.mxu3 %vm567_vm3, %v386_v29  ;;  %v2004_v30 = vld [vmem:[%s2296_s6] sm:$0xff]  ;;  %v2037_v43 = vld [vmem:[%s2295_s5 + $0x8] sm:$0xff]  ;;  %v2044_v44 = vld [vmem:[%s2295_s5 + $0x10] sm:$0xff] }
  0x12   : > { %1696 = vmatmul.msk.f32.vlgmr.msra.gmra.mxu1 %vm391_vm1, %v1926_v3  ;;  %v2030_v42 = vld [vmem:[%s2295_s5] sm:$0xff]  ;;  %v549_v45 = vld [vmem:[%s2295_s5 + $0x18] sm:$0x3f]  ;;  %v2063_v63 = vld [vmem:[%s2297_s7 + $0x8] sm:$0xff] }
  0x13   : > { %v2056_v62 = vld [vmem:[%s2297_s7] sm:$0xff]  ;;  %v2070_v0 = vld [vmem:[%s2297_s7 + $0x10] sm:$0xff]  ;;  %v651_v2 = vld [vmem:[%s2297_s7 + $0x18] sm:$0x3f] }
  0x18   : > { %1695 = vmatmul.msk.f32.gmra.mxu0 %vm391_vm1, %v1937_v4  ;;  %1709 = vmatmul.msk.f32.vlgmr.msrb.gmra.mxu3 %vm554_vm4, %v2004_v30 }
  0x20   : > { %1710 = vmatmul.msk.f32.gmra.mxu3 %vm554_vm4, %v2011_v32 }
  0x28   : > { %1711 = vmatmul.msk.f32.gmra.mxu3 %vm554_vm4, %v2018_v34 }
  0x30   : > { %1712 = vmatmul.msk.f32.gmra.mxu3 %vm554_vm4, %v553_v36  ;;  %v804_v36 = vld [vmem:[%s2292_s2 + $0x18] sm:$0x3f] }
  0x8d   : > { %v425_v5 = vpop.f32.mrf.mxu0 }
  0x8e   : > { %v437_v12 = vmax.f32 %v425_v5, 0.0 }
  0x8f   : > { %v431_v6 = vpop.f32.mrf.mxu1 }
  0x90   : > { %v439_v9 = vmax.f32 %v431_v6, 0.0 }
  0x93   : > { %v434_v7 = vpop.f32.mrf.mxu3 }
  0x94   : > { %v440_v8 = vmax.f32 %v434_v7, 0.0 }
  0x95   : > { %v428_v10 = vpop.f32.mrf.mxu0 }
  0x96   : > { %1698 = vmatpush.msk.msrb.mxu1 %vm404_vm0, %v440_v8  ;;  %v438_v11 = vmax.f32 %v428_v10, 0.0 }
  0x98   : > { %474 = vmatpush.msrb.mxu1 %v439_v9 }
  0x9a   : > { %475 = vmatpush.msrb.mxu1 %v438_v11 }
  0x9b   : > { %v588_v46 = vpop.f32.mrf.mxu3 }
  0x9c   : > { %476 = vmatpush.msrb.mxu1 %v437_v12 }
  0x9d   : > { %1699 = vmatmul.msk.f32.vlgmr.msrb.gmra.mxu1 %vm445_vm2, %v1945_v13 }
  0xa3   : > { %v591_v48 = vpop.f32.mrf.mxu3 }
  0xa5   : > { %1700 = vmatmul.msk.f32.gmra.mxu1 %vm445_vm2, %v1952_v14 }
  0xab   : > { %v594_v50 = vpop.f32.mrf.mxu3 }
  0xad   : > { %1701 = vmatmul.msk.f32.gmra.mxu1 %vm445_vm2, %v1959_v15 }
  0xb3   : > { %v597_v52 = vpop.f32.mrf.mxu3 }
  0xb5   : > { %1702 = vmatmul.msk.f32.gmra.mxu1 %vm445_vm2, %v444_v16  ;;  %v2082_v16 = vld [vmem:[%s2298_s8] sm:$0xff] }
 0x11a   : > { %v478_v17 = vpop.f32.mrf.mxu1 }
 0x11b   : > { %v490_v24 = vmax.f32 %v478_v17, 0.0  ;;  %v2089_v17 = vld [vmem:[%s2298_s8 + $0x8] sm:$0xff] }
 0x122   : > { %v481_v18 = vpop.f32.mrf.mxu1 }
 0x123   : > { %v491_v23 = vmax.f32 %v481_v18, 0.0  ;;  %v2096_v18 = vld [vmem:[%s2298_s8 + $0x10] sm:$0xff] }
 0x12a   : > { %v484_v19 = vpop.f32.mrf.mxu1 }
 0x12b   : > { %v492_v22 = vmax.f32 %v484_v19, 0.0  ;;  %v703_v19 = vld [vmem:[%s2298_s8 + $0x18] sm:$0x3f] }
 0x132   : > { %v487_v20 = vpop.f32.mrf.mxu1 }
 0x133   : > { %v493_v21 = vmax.f32 %v487_v20, 0.0 }
 0x135   : > { %1703 = vmatpush.msk.msra.mxu2 %vm404_vm0, %v493_v21 }
 0x137   : > { %526 = vmatpush.msra.mxu2 %v492_v22 }
 0x139   : > { %527 = vmatpush.msra.mxu2 %v491_v23 }
 0x13b   : > { %528 = vmatpush.msra.mxu2 %v490_v24 }
 0x13c   : > { %1704 = vmatmul.msk.f32.vlgmr.msra.gmra.mxu2 %vm445_vm2, %v1971_v25 }
 0x144   : > { %1705 = vmatmul.msk.f32.gmra.mxu2 %vm445_vm2, %v1978_v26 }
 0x14c   : > { %1706 = vmatmul.msk.f32.gmra.mxu2 %vm445_vm2, %v1985_v27 }
 0x154   : > { %1707 = vmatmul.msk.f32.gmra.mxu2 %vm445_vm2, %v497_v28 }
 0x1bf   : > { %v530_v31 = vpop.f32.mrf.mxu2 }
 0x1c0   : > { %v542_v41 = vmax.f32 %v530_v31, 0.0 }
 0x1c7   : > { %v533_v33 = vpop.f32.mrf.mxu2 }
 0x1c8   : > { %v543_v40 = vmax.f32 %v533_v33, 0.0  ;;  %v752_v33 = vld [vmem:[%s2299_s9] sm:$0x3f] }
 0x1cf   : > { %v536_v35 = vpop.f32.mrf.mxu2 }
 0x1d0   : > { %v544_v39 = vmax.f32 %v536_v35, 0.0  ;;  %v799_v35 = vld [vmem:[%s1910_s19 + $0x8] sm:$0x3f] }
 0x1d7   : > { %v539_v37 = vpop.f32.mrf.mxu2 }
 0x1d8   : > { %v545_v38 = vmax.f32 %v539_v37, 0.0 }
 0x1da   : > { %1713 = vmatpush.msk.msrb.mxu0 %vm404_vm0, %v545_v38 }
 0x1dc   : > { %628 = vmatpush.msrb.mxu0 %v544_v39 }
 0x1de   : > { %629 = vmatpush.msrb.mxu0 %v543_v40 }
 0x1e0   : > { %630 = vmatpush.msrb.mxu0 %v542_v41 }
 0x1e1   : > { %1714 = vmatmul.msk.f32.vlgmr.msrb.gmra.mxu0 %vm445_vm2, %v2030_v42 }
 0x1e9   : > { %1715 = vmatmul.msk.f32.gmra.mxu0 %vm445_vm2, %v2037_v43 }
 0x1f1   : > { %1716 = vmatmul.msk.f32.gmra.mxu0 %vm445_vm2, %v2044_v44 }
 0x1f9   : > { %1717 = vmatmul.msk.f32.gmra.mxu0 %vm445_vm2, %v549_v45 }
 0x25e   : > { %v632_v47 = vpop.f32.mrf.mxu0 }
 0x25f   : > { %v633_v58 = vadd.f32 %v632_v47, %v588_v46 }
 0x261   : > { %v644_v61 = vmax.f32 %v633_v58, 0.0 }
 0x266   : > { %v635_v49 = vpop.f32.mrf.mxu0 }
 0x267   : > { %v636_v56 = vadd.f32 %v635_v49, %v591_v48 }
 0x269   : > { %v645_v60 = vmax.f32 %v636_v56, 0.0 }
 0x26e   : > { %v638_v51 = vpop.f32.mrf.mxu0 }
 0x26f   : > { %v639_v54 = vadd.f32 %v638_v51, %v594_v50 }
 0x271   : > { %v646_v59 = vmax.f32 %v639_v54, 0.0 }
 0x276   : > { %v641_v53 = vpop.f32.mrf.mxu0 }
 0x277   : > { %v642_v55 = vadd.f32 %v641_v53, %v597_v52 }
 0x279   : > { %v647_v57 = vmax.f32 %v642_v55, 0.0 }
 0x27b   : > { %1718 = vmatpush.msk.msra.mxu3 %vm404_vm0, %v647_v57 }
 0x27d   : > { %680 = vmatpush.msra.mxu3 %v646_v59 }
 0x27f   : > { %681 = vmatpush.msra.mxu3 %v645_v60 }
 0x281   : > { %682 = vmatpush.msra.mxu3 %v644_v61 }
 0x282   : > { %1719 = vmatmul.msk.f32.vlgmr.msra.gmra.mxu3 %vm445_vm2, %v2056_v62 }
 0x28a   : > { %1720 = vmatmul.msk.f32.gmra.mxu3 %vm445_vm2, %v2063_v63 }
 0x292   : > { %1721 = vmatmul.msk.f32.gmra.mxu3 %vm445_vm2, %v2070_v0 }
 0x29a   : > { %1722 = vmatmul.msk.f32.gmra.mxu3 %vm445_vm2, %v651_v2  ;;  %v856_v2 = vld [vmem:[%s2293_s3 + $0x18] sm:$0x3f] }
 0x305   : > { %v684_v5 = vpop.f32.mrf.mxu3 }
 0x306   : > { %v696_v12 = vmax.f32 %v684_v5, 0.0 }
 0x30d   : > { %v687_v6 = vpop.f32.mrf.mxu3 }
 0x30e   : > { %v697_v11 = vmax.f32 %v687_v6, 0.0 }
 0x315   : > { %v690_v7 = vpop.f32.mrf.mxu3 }
 0x316   : > { %v698_v10 = vmax.f32 %v690_v7, 0.0 }
 0x31d   : > { %v693_v8 = vpop.f32.mrf.mxu3 }
 0x31e   : > { %v699_v9 = vmax.f32 %v693_v8, 0.0 }
 0x320   : > { %1723 = vmatpush.msk.msra.mxu1 %vm404_vm0, %v699_v9 }
 0x322   : > { %732 = vmatpush.msra.mxu1 %v698_v10 }
 0x324   : > { %733 = vmatpush.msra.mxu1 %v697_v11 }
 0x326   : > { %734 = vmatpush.msra.mxu1 %v696_v12 }
 0x327   : > { %1724 = vmatmul.msk.f32.vlgmr.msra.gmra.mxu1 %vm445_vm2, %v2082_v16 }
 0x32f   : > { %1725 = vmatmul.msk.f32.gmra.mxu1 %vm445_vm2, %v2089_v17 }
 0x337   : > { %1726 = vmatmul.msk.f32.gmra.mxu1 %vm445_vm2, %v2096_v18 }
 0x33f   : > { %1727 = vmatmul.msk.f32.gmra.mxu1 %vm445_vm2, %v703_v19  ;;  %v908_v19 = vld [vmem:[%s2294_s4 + $0x18] sm:$0x3f] }
 0x3a4   : > { %v736_v20 = vpop.f32.mrf.mxu1 }
 0x3a5   : > { %v748_v31 = vmax.f32 %v736_v20, 0.0  ;;  %v800_v20 = vld [vmem:[%s1997_s11 + $0x4] sm:$0x7] }
 0x3a6   : > { %1746 = vmatpush.msk.msrb.mxu1 %vm567_vm3, %v800_v20 }
 0x3a7   : > { %1747 = vmatmul.msk.f32.vlgmr.msrb.gmra.mxu1 %vm554_vm4, %v2004_v30 }
 0x3ac   : > { %v739_v21 = vpop.f32.mrf.mxu1 }
 0x3ad   : > { %v749_v29 = vmax.f32 %v739_v21, 0.0 }
 0x3af   : > { %1748 = vmatmul.msk.f32.gmra.mxu1 %vm554_vm4, %v2011_v32 }
 0x3b4   : > { %v742_v22 = vpop.f32.mrf.mxu1 }
 0x3b5   : > { %v750_v28 = vmax.f32 %v742_v22, 0.0 }
 0x3b7   : > { %1749 = vmatmul.msk.f32.gmra.mxu1 %vm554_vm4, %v2018_v34 }
 0x3bc   : > { %v745_v23 = vpop.f32.mrf.mxu1 }
 0x3bd   : > { %v751_v24 = vmax.f32 %v745_v23, 0.0 }
 0x3bf   : > { %1728 = vmatpush.msk.msrb.mxu2 %vm404_vm0, %v751_v24 }
 0x3c1   : > { %772 = vmatpush.msrb.mxu2 %v750_v28 }
 0x3c3   : > { %773 = vmatpush.msrb.mxu2 %v749_v29  ;;  %v964_v29 = vld [vmem:[%s2296_s6 + $0x18] sm:$0x3f] }
 0x3c4   : > { %1750 = vmatmul.msk.f32.gmra.mxu1 %vm554_vm4, %v964_v29 }
 0x3c5   : > { %774 = vmatpush.msrb.mxu2 %v748_v31 }
 0x3c6   : > { %1729 = vmatmul.msk.f32.vlgmr.msrb.gmra.mxu2 %vm445_vm2, %v752_v33 }
 0x3c7   : > { %1731 = vmatpush.msk.msra.mxu2 %vm404_vm0, %v799_v35 }
 0x3ce   : > { %1732 = vmatmul.msk.f32.vlgmr.msra.gmra.mxu2 %vm391_vm1, %v1918_v1 }
 0x3d6   : > { %1733 = vmatmul.msk.f32.gmra.mxu2 %vm391_vm1, %v1937_v4 }
 0x3de   : > { %1734 = vmatmul.msk.f32.gmra.mxu2 %vm391_vm1, %v1926_v3 }
 0x3e6   : > { %1735 = vmatmul.msk.f32.gmra.mxu2 %vm391_vm1, %v804_v36  ;;  %v960_v36 = vld [vmem:[%s2295_s5 + $0x18] sm:$0x3f] }
 0x449   : > { %v776_v37 = vpop.f32.mrf.mxu2 }
 0x44a   : > { %v1730_v38 = vmul.f32 -1.442695, %v776_v37  ;;  %v997_v37 = vpop.f32.mrf.mxu1 }
 0x44c   : > { %1819 = vpow2.f32 %v1730_v38 }
 0x451   : > { %v837_v39 = vpop.f32.mrf.mxu2 }
 0x452   : > { %v1820_v40 = vpop.eup %1819  ;;  %v849_v61 = vmax.f32 %v837_v39, 0.0  ;;  %v1000_v39 = vpop.f32.mrf.mxu1 }
 0x453   : > { %v782_v41 = vadd.f32 1.0, %v1820_v40 }
 0x455   : > { %1821 = vrcp.f32 %v782_v41  ;;  %v794_v49 = vand.u32 2147483648, %v782_v41  ;;  %v792_v51 = vand.u32 2147483647, %v782_v41  ;;  %vm788_vm6 = vweird.f32 %v782_v41 }
 0x457   : > { %v795_v54 = vor.u32 1.1754944e-38, %v794_v49  ;;  %vm793_vm8 = vcmp.eq.f32.partialorder %v792_v51, 8.507059e+37 }
 0x459   : > { %v840_v45 = vpop.f32.mrf.mxu2 }
 0x45a   : > { %v850_v60 = vmax.f32 %v840_v45, 0.0 }
 0x45b   : > { %v1822_v46 = vpop.eup %1821 }
 0x45c   : > { %v784_v47 = vmul.f32 %v1822_v46, %v782_v41  ;;  %vm789_vm5 = vweird.f32 %v1822_v46  ;;  %v1003_v41 = vpop.f32.mrf.mxu1 }
 0x45d   : > { %vm790_vm7 = vmor %vm788_vm6, %vm789_vm5 }
 0x45e   : > { %v785_v48 = vsub.f32 1.0, %v784_v47 }
 0x460   : > { %v786_v50 = vmul.f32 %v1822_v46, %v785_v48 }
 0x461   : > { %v843_v52 = vpop.f32.mrf.mxu2 }
 0x462   : > { %v787_v53 = vadd.f32 %v1822_v46, %v786_v50  ;;  %v851_v59 = vmax.f32 %v843_v52, 0.0 }
 0x464   : > { %v791_v55 = vsel %vm790_vm7, %v1822_v46, %v787_v53  ;;  %v1006_v46 = vpop.f32.mrf.mxu1 }
 0x465   : > { %v796_v56 = vsel %vm793_vm8, %v795_v54, %v791_v55 }
 0x466   : > { %798 = vst [vmem:[%s2126_s24] sm:$0x3f] %v796_v56  ;;  %v1060_v56 = vld [vmem:[%s2297_s7 + $0x18] sm:$0x3f] }
 0x469   : > { %v846_v57 = vpop.f32.mrf.mxu2 }
 0x46a   : > { %v852_v58 = vmax.f32 %v846_v57, 0.0 }
 0x46c   : > { %1736 = vmatpush.msk.msra.mxu0 %vm404_vm0, %v852_v58 }
 0x46e   : > { %885 = vmatpush.msra.mxu0 %v851_v59 }
 0x470   : > { %886 = vmatpush.msra.mxu0 %v850_v60 }
 0x472   : > { %887 = vmatpush.msra.mxu0 %v849_v61 }
 0x473   : > { %1737 = vmatmul.msk.f32.vlgmr.msra.gmra.mxu0 %vm445_vm2, %v1945_v13 }
 0x47b   : > { %1738 = vmatmul.msk.f32.gmra.mxu0 %vm445_vm2, %v1952_v14 }
 0x483   : > { %1739 = vmatmul.msk.f32.gmra.mxu0 %vm445_vm2, %v1959_v15 }
 0x48b   : > { %1740 = vmatmul.msk.f32.gmra.mxu0 %vm445_vm2, %v856_v2 }
 0x4f0   : > { %v889_v5 = vpop.f32.mrf.mxu0 }
 0x4f1   : > { %v901_v12 = vmax.f32 %v889_v5, 0.0 }
 0x4f8   : > { %v892_v6 = vpop.f32.mrf.mxu0 }
 0x4f9   : > { %v902_v11 = vmax.f32 %v892_v6, 0.0 }
 0x500   : > { %v895_v7 = vpop.f32.mrf.mxu0 }
 0x501   : > { %v903_v10 = vmax.f32 %v895_v7, 0.0  ;;  %v1112_v7 = vld [vmem:[%s2298_s8 + $0x18] sm:$0x3f] }
 0x508   : > { %v898_v8 = vpop.f32.mrf.mxu0 }
 0x509   : > { %v904_v9 = vmax.f32 %v898_v8, 0.0 }
 0x50b   : > { %1741 = vmatpush.msk.msrb.mxu3 %vm404_vm0, %v904_v9 }
 0x50d   : > { %937 = vmatpush.msrb.mxu3 %v903_v10 }
 0x50f   : > { %938 = vmatpush.msrb.mxu3 %v902_v11 }
 0x511   : > { %939 = vmatpush.msrb.mxu3 %v901_v12 }
 0x512   : > { %1742 = vmatmul.msk.f32.vlgmr.msrb.gmra.mxu3 %vm445_vm2, %v1971_v25 }
 0x51a   : > { %1743 = vmatmul.msk.f32.gmra.mxu3 %vm445_vm2, %v1978_v26 }
 0x522   : > { %1744 = vmatmul.msk.f32.gmra.mxu3 %vm445_vm2, %v1985_v27 }
 0x52a   : > { %1745 = vmatmul.msk.f32.gmra.mxu3 %vm445_vm2, %v908_v19 }
 0x595   : > { %v941_v21 = vpop.f32.mrf.mxu3 }
 0x596   : > { %v953_v35 = vmax.f32 %v941_v21, 0.0 }
 0x59d   : > { %v944_v22 = vpop.f32.mrf.mxu3 }
 0x59e   : > { %v954_v33 = vmax.f32 %v944_v22, 0.0  ;;  %v1161_v22 = vld [vmem:[%s2299_s9] sm:$0x3f] }
 0x5a5   : > { %v947_v23 = vpop.f32.mrf.mxu3 }
 0x5a6   : > { %v955_v31 = vmax.f32 %v947_v23, 0.0  ;;  %v1208_v23 = vld [vmem:[%s1910_s19 + $0x10] sm:$0x3f] }
 0x5ad   : > { %v950_v24 = vpop.f32.mrf.mxu3 }
 0x5ae   : > { %v956_v28 = vmax.f32 %v950_v24, 0.0  ;;  %v1213_v24 = vld [vmem:[%s2292_s2 + $0x18] sm:$0x3f] }
 0x5b0   : > { %1751 = vmatpush.msk.msrb.mxu2 %vm404_vm0, %v956_v28 }
 0x5b2   : > { %1037 = vmatpush.msrb.mxu2 %v955_v31 }
 0x5b4   : > { %1038 = vmatpush.msrb.mxu2 %v954_v33 }
 0x5b6   : > { %1039 = vmatpush.msrb.mxu2 %v953_v35 }
 0x5b7   : > { %1752 = vmatmul.msk.f32.vlgmr.msrb.gmra.mxu2 %vm445_vm2, %v2030_v42 }
 0x5bf   : > { %1753 = vmatmul.msk.f32.gmra.mxu2 %vm445_vm2, %v2037_v43 }
 0x5c7   : > { %1754 = vmatmul.msk.f32.gmra.mxu2 %vm445_vm2, %v2044_v44 }
 0x5cf   : > { %1755 = vmatmul.msk.f32.gmra.mxu2 %vm445_vm2, %v960_v36 }
 0x63a   : > { %v1041_v38 = vpop.f32.mrf.mxu2 }
 0x63b   : > { %v1042_v52 = vadd.f32 %v1041_v38, %v997_v37 }
 0x63d   : > { %v1053_v55 = vmax.f32 %v1042_v52, 0.0 }
 0x642   : > { %v1044_v40 = vpop.f32.mrf.mxu2 }
 0x643   : > { %v1045_v50 = vadd.f32 %v1044_v40, %v1000_v39 }
 0x645   : > { %v1054_v54 = vmax.f32 %v1045_v50, 0.0 }
 0x64a   : > { %v1047_v45 = vpop.f32.mrf.mxu2 }
 0x64b   : > { %v1048_v48 = vadd.f32 %v1047_v45, %v1003_v41 }
 0x64d   : > { %v1055_v53 = vmax.f32 %v1048_v48, 0.0 }
 0x652   : > { %v1050_v47 = vpop.f32.mrf.mxu2 }
 0x653   : > { %v1051_v49 = vadd.f32 %v1050_v47, %v1006_v46 }
 0x655   : > { %v1056_v51 = vmax.f32 %v1051_v49, 0.0 }
 0x657   : > { %1756 = vmatpush.msk.msrb.mxu0 %vm404_vm0, %v1056_v51 }
 0x659   : > { %1089 = vmatpush.msrb.mxu0 %v1055_v53  ;;  %v1265_v53 = vld [vmem:[%s2293_s3 + $0x18] sm:$0x3f] }
 0x65b   : > { %1090 = vmatpush.msrb.mxu0 %v1054_v54 }
 0x65d   : > { %1091 = vmatpush.msrb.mxu0 %v1053_v55 }
 0x65e   : > { %1757 = vmatmul.msk.f32.vlgmr.msrb.gmra.mxu0 %vm445_vm2, %v2056_v62 }
 0x666   : > { %1758 = vmatmul.msk.f32.gmra.mxu0 %vm445_vm2, %v2063_v63 }
 0x66e   : > { %1759 = vmatmul.msk.f32.gmra.mxu0 %vm445_vm2, %v2070_v0 }
 0x676   : > { %1760 = vmatmul.msk.f32.gmra.mxu0 %vm445_vm2, %v1060_v56 }
 0x6db   : > { %v1093_v57 = vpop.f32.mrf.mxu0 }
 0x6dc   : > { %v1105_v6 = vmax.f32 %v1093_v57, 0.0 }
 0x6e3   : > { %v1096_v58 = vpop.f32.mrf.mxu0 }
 0x6e4   : > { %v1106_v5 = vmax.f32 %v1096_v58, 0.0 }
 0x6eb   : > { %v1099_v59 = vpop.f32.mrf.mxu0 }
 0x6ec   : > { %v1107_v2 = vmax.f32 %v1099_v59, 0.0 }
 0x6f3   : > { %v1102_v60 = vpop.f32.mrf.mxu0 }
 0x6f4   : > { %v1108_v61 = vmax.f32 %v1102_v60, 0.0  ;;  %v1209_v60 = vld [vmem:[%s1997_s11 + $0x8] sm:$0x7] }
 0x6f6   : > { %1761 = vmatpush.msk.msra.mxu3 %vm404_vm0, %v1108_v61  ;;  %v1373_v61 = vld [vmem:[%s2296_s6 + $0x18] sm:$0x3f] }
 0x6f8   : > { %1141 = vmatpush.msra.mxu3 %v1107_v2 }
 0x6fa   : > { %1142 = vmatpush.msra.mxu3 %v1106_v5 }
 0x6fc   : > { %1143 = vmatpush.msra.mxu3 %v1105_v6 }
 0x6fd   : > { %1762 = vmatmul.msk.f32.vlgmr.msra.gmra.mxu3 %vm445_vm2, %v2082_v16 }
 0x6fe   : > { %1784 = vmatpush.msk.msrb.mxu3 %vm567_vm3, %v1209_v60 }
 0x705   : > { %1763 = vmatmul.msk.f32.gmra.mxu3 %vm445_vm2, %v2089_v17 }
 0x70d   : > { %1764 = vmatmul.msk.f32.gmra.mxu3 %vm445_vm2, %v2096_v18 }
 0x715   : > { %1765 = vmatmul.msk.f32.gmra.mxu3 %vm445_vm2, %v1112_v7 }
 0x71d   : > { %1785 = vmatmul.msk.f32.vlgmr.msrb.gmra.mxu3 %vm554_vm4, %v2004_v30 }
 0x725   : > { %1786 = vmatmul.msk.f32.gmra.mxu3 %vm554_vm4, %v2011_v32 }
 0x72d   : > { %1787 = vmatmul.msk.f32.gmra.mxu3 %vm554_vm4, %v2018_v34  ;;  %v1369_v34 = vld [vmem:[%s2295_s5 + $0x18] sm:$0x3f] }
 0x735   : > { %1788 = vmatmul.msk.f32.gmra.mxu3 %vm554_vm4, %v1373_v61 }
 0x780   : > { %v1145_v8 = vpop.f32.mrf.mxu3 }
 0x781   : > { %v1157_v21 = vmax.f32 %v1145_v8, 0.0 }
 0x788   : > { %v1148_v9 = vpop.f32.mrf.mxu3 }
 0x789   : > { %v1158_v20 = vmax.f32 %v1148_v9, 0.0 }
 0x790   : > { %v1151_v10 = vpop.f32.mrf.mxu3 }
 0x791   : > { %v1159_v19 = vmax.f32 %v1151_v10, 0.0 }
 0x798   : > { %v1154_v11 = vpop.f32.mrf.mxu3 }
 0x799   : > { %v1160_v12 = vmax.f32 %v1154_v11, 0.0 }
 0x79b   : > { %1766 = vmatpush.msk.msra.mxu1 %vm404_vm0, %v1160_v12 }
 0x79d   : > { %1181 = vmatpush.msra.mxu1 %v1159_v19 }
 0x79f   : > { %1182 = vmatpush.msra.mxu1 %v1158_v20 }
 0x7a0   : > { %v1406_v7 = vpop.f32.mrf.mxu3 }
 0x7a1   : > { %1183 = vmatpush.msra.mxu1 %v1157_v21 }
 0x7a2   : > { %1767 = vmatmul.msk.f32.vlgmr.msra.gmra.mxu1 %vm445_vm2, %v1161_v22 }
 0x7a3   : > { %1769 = vmatpush.msk.msrb.mxu1 %vm404_vm0, %v1208_v23 }
 0x7a8   : > { %v1409_v9 = vpop.f32.mrf.mxu3 }
 0x7aa   : > { %1770 = vmatmul.msk.f32.vlgmr.msrb.gmra.mxu1 %vm391_vm1, %v1918_v1 }
 0x7b0   : > { %v1412_v11 = vpop.f32.mrf.mxu3 }
 0x7b2   : > { %1771 = vmatmul.msk.f32.gmra.mxu1 %vm391_vm1, %v1937_v4 }
 0x7b8   : > { %v1415_v19 = vpop.f32.mrf.mxu3 }
 0x7ba   : > { %1772 = vmatmul.msk.f32.gmra.mxu1 %vm391_vm1, %v1926_v3 }
 0x7c2   : > { %1773 = vmatmul.msk.f32.gmra.mxu1 %vm391_vm1, %v1213_v24 }
 0x81f   : > { %v1185_v28 = vpop.f32.mrf.mxu1 }
 0x820   : > { %v1768_v29 = vmul.f32 -1.442695, %v1185_v28 }
 0x822   : > { %1823 = vpow2.f32 %v1768_v29  ;;  %v1469_v29 = vld [vmem:[%s2297_s7 + $0x18] sm:$0x3f] }
 0x827   : > { %v1246_v31 = vpop.f32.mrf.mxu1 }
 0x828   : > { %v1824_v33 = vpop.eup %1823  ;;  %v1258_v52 = vmax.f32 %v1246_v31, 0.0 }
 0x829   : > { %v1191_v35 = vadd.f32 1.0, %v1824_v33 }
 0x82b   : > { %1825 = vrcp.f32 %v1191_v35  ;;  %v1203_v38 = vand.u32 2147483648, %v1191_v35  ;;  %v1201_v39 = vand.u32 2147483647, %v1191_v35  ;;  %vm1197_vm10 = vweird.f32 %v1191_v35 }
 0x82d   : > { %v1204_v45 = vor.u32 1.1754944e-38, %v1203_v38  ;;  %vm1202_vm12 = vcmp.eq.f32.partialorder %v1201_v39, 8.507059e+37 }
 0x82f   : > { %v1249_v1 = vpop.f32.mrf.mxu1 }
 0x830   : > { %v1259_v51 = vmax.f32 %v1249_v1, 0.0 }
 0x831   : > { %v1826_v36 = vpop.eup %1825 }
 0x832   : > { %v1193_v4 = vmul.f32 %v1826_v36, %v1191_v35  ;;  %vm1198_vm9 = vweird.f32 %v1826_v36 }
 0x833   : > { %vm1199_vm11 = vmor %vm1197_vm10, %vm1198_vm9 }
 0x834   : > { %v1194_v37 = vsub.f32 1.0, %v1193_v4 }
 0x836   : > { %v1195_v3 = vmul.f32 %v1826_v36, %v1194_v37 }
 0x837   : > { %v1252_v40 = vpop.f32.mrf.mxu1 }
 0x838   : > { %v1196_v41 = vadd.f32 %v1826_v36, %v1195_v3  ;;  %v1260_v50 = vmax.f32 %v1252_v40, 0.0 }
 0x83a   : > { %v1200_v46 = vsel %vm1199_vm11, %v1826_v36, %v1196_v41 }
 0x83b   : > { %v1205_v47 = vsel %vm1202_vm12, %v1204_v45, %v1200_v46 }
 0x83c   : > { %1207 = vst [vmem:[%s2126_s24 + $0x8] sm:$0x3f] %v1205_v47 }
 0x83f   : > { %v1255_v48 = vpop.f32.mrf.mxu1 }
 0x840   : > { %v1261_v49 = vmax.f32 %v1255_v48, 0.0 }
 0x842   : > { %1774 = vmatpush.msk.msra.mxu2 %vm404_vm0, %v1261_v49 }
 0x844   : > { %1294 = vmatpush.msra.mxu2 %v1260_v50 }
 0x846   : > { %1295 = vmatpush.msra.mxu2 %v1259_v51 }
 0x848   : > { %1296 = vmatpush.msra.mxu2 %v1258_v52 }
 0x849   : > { %1775 = vmatmul.msk.f32.vlgmr.msra.gmra.mxu2 %vm445_vm2, %v1945_v13 }
 0x851   : > { %1776 = vmatmul.msk.f32.gmra.mxu2 %vm445_vm2, %v1952_v14 }
 0x859   : > { %1777 = vmatmul.msk.f32.gmra.mxu2 %vm445_vm2, %v1959_v15  ;;  %v1317_v15 = vld [vmem:[%s2294_s4 + $0x18] sm:$0x3f] }
 0x861   : > { %1778 = vmatmul.msk.f32.gmra.mxu2 %vm445_vm2, %v1265_v53 }
 0x8cc   : > { %v1298_v54 = vpop.f32.mrf.mxu2 }
 0x8cd   : > { %v1310_v14 = vmax.f32 %v1298_v54, 0.0 }
 0x8d4   : > { %v1301_v55 = vpop.f32.mrf.mxu2 }
 0x8d5   : > { %v1311_v13 = vmax.f32 %v1301_v55, 0.0 }
 0x8dc   : > { %v1304_v56 = vpop.f32.mrf.mxu2 }
 0x8dd   : > { %v1312_v59 = vmax.f32 %v1304_v56, 0.0 }
 0x8e4   : > { %v1307_v57 = vpop.f32.mrf.mxu2 }
 0x8e5   : > { %v1313_v58 = vmax.f32 %v1307_v57, 0.0 }
 0x8e7   : > { %1779 = vmatpush.msk.msra.mxu0 %vm404_vm0, %v1313_v58 }
 0x8e9   : > { %1346 = vmatpush.msra.mxu0 %v1312_v59 }
 0x8eb   : > { %1347 = vmatpush.msra.mxu0 %v1311_v13 }
 0x8ed   : > { %1348 = vmatpush.msra.mxu0 %v1310_v14 }
 0x8ee   : > { %1780 = vmatmul.msk.f32.vlgmr.msra.gmra.mxu0 %vm445_vm2, %v1971_v25 }
 0x8f6   : > { %1781 = vmatmul.msk.f32.gmra.mxu0 %vm445_vm2, %v1978_v26 }
 0x8fe   : > { %1782 = vmatmul.msk.f32.gmra.mxu0 %vm445_vm2, %v1985_v27 }
 0x906   : > { %1783 = vmatmul.msk.f32.gmra.mxu0 %vm445_vm2, %v1317_v15 }
 0x96b   : > { %v1350_v25 = vpop.f32.mrf.mxu0 }
 0x96c   : > { %v1362_v32 = vmax.f32 %v1350_v25, 0.0 }
 0x973   : > { %v1353_v26 = vpop.f32.mrf.mxu0 }
 0x974   : > { %v1363_v30 = vmax.f32 %v1353_v26, 0.0 }
 0x97b   : > { %v1356_v27 = vpop.f32.mrf.mxu0 }
 0x97c   : > { %v1364_v6 = vmax.f32 %v1356_v27, 0.0 }
 0x983   : > { %v1359_v2 = vpop.f32.mrf.mxu0 }
 0x984   : > { %v1365_v5 = vmax.f32 %v1359_v2, 0.0 }
 0x986   : > { %1789 = vmatpush.msk.msra.mxu1 %vm404_vm0, %v1365_v5 }
 0x988   : > { %1446 = vmatpush.msra.mxu1 %v1364_v6 }
 0x98a   : > { %1447 = vmatpush.msra.mxu1 %v1363_v30 }
 0x98c   : > { %1448 = vmatpush.msra.mxu1 %v1362_v32 }
 0x98d   : > { %1790 = vmatmul.msk.f32.vlgmr.msra.gmra.mxu1 %vm445_vm2, %v2030_v42 }
 0x995   : > { %1791 = vmatmul.msk.f32.gmra.mxu1 %vm445_vm2, %v2037_v43 }
 0x99d   : > { %1792 = vmatmul.msk.f32.gmra.mxu1 %vm445_vm2, %v2044_v44 }
 0x9a5   : > { %1793 = vmatmul.msk.f32.gmra.mxu1 %vm445_vm2, %v1369_v34 }
 0xa0a   : > { %v1450_v8 = vpop.f32.mrf.mxu1 }
 0xa0b   : > { %v1451_v23 = vadd.f32 %v1450_v8, %v1406_v7 }
 0xa0d   : > { %v1462_v28 = vmax.f32 %v1451_v23, 0.0 }
 0xa12   : > { %v1453_v10 = vpop.f32.mrf.mxu1 }
 0xa13   : > { %v1454_v43 = vadd.f32 %v1453_v10, %v1409_v9 }
 0xa15   : > { %v1463_v24 = vmax.f32 %v1454_v43, 0.0 }
 0xa1a   : > { %v1456_v12 = vpop.f32.mrf.mxu1 }
 0xa1b   : > { %v1457_v20 = vadd.f32 %v1456_v12, %v1412_v11 }
 0xa1d   : > { %v1464_v44 = vmax.f32 %v1457_v20, 0.0 }
 0xa22   : > { %v1459_v42 = vpop.f32.mrf.mxu1 }
 0xa23   : > { %v1460_v21 = vadd.f32 %v1459_v42, %v1415_v19 }
 0xa25   : > { %v1465_v22 = vmax.f32 %v1460_v21, 0.0 }
 0xa27   : > { %1794 = vmatpush.msk.msrb.mxu2 %vm404_vm0, %v1465_v22 }
 0xa29   : > { %1498 = vmatpush.msrb.mxu2 %v1464_v44 }
 0xa2b   : > { %1499 = vmatpush.msrb.mxu2 %v1463_v24 }
 0xa2d   : > { %1500 = vmatpush.msrb.mxu2 %v1462_v28 }
 0xa2e   : > { %1795 = vmatmul.msk.f32.vlgmr.msrb.gmra.mxu2 %vm445_vm2, %v2056_v62 }
 0xa36   : > { %1796 = vmatmul.msk.f32.gmra.mxu2 %vm445_vm2, %v2063_v63 }
 0xa3e   : > { %1797 = vmatmul.msk.f32.gmra.mxu2 %vm445_vm2, %v2070_v0  ;;  %v1521_v0 = vld [vmem:[%s2298_s8 + $0x18] sm:$0x3f] }
 0xa46   : > { %1798 = vmatmul.msk.f32.gmra.mxu2 %vm445_vm2, %v1469_v29 }
 0xab1   : > { %v1502_v31 = vpop.f32.mrf.mxu2 }
 0xab2   : > { %v1514_v63 = vmax.f32 %v1502_v31, 0.0 }
 0xab9   : > { %v1505_v33 = vpop.f32.mrf.mxu2 }
 0xaba   : > { %v1515_v62 = vmax.f32 %v1505_v33, 0.0 }
 0xac1   : > { %v1508_v35 = vpop.f32.mrf.mxu2 }
 0xac2   : > { %v1516_v4 = vmax.f32 %v1508_v35, 0.0 }
 0xac9   : > { %v1511_v1 = vpop.f32.mrf.mxu2 }
 0xaca   : > { %v1517_v36 = vmax.f32 %v1511_v1, 0.0 }
 0xacc   : > { %1799 = vmatpush.msk.msrb.mxu0 %vm404_vm0, %v1517_v36 }
 0xace   : > { %1550 = vmatpush.msrb.mxu0 %v1516_v4 }
 0xad0   : > { %1551 = vmatpush.msrb.mxu0 %v1515_v62 }
 0xad2   : > { %1552 = vmatpush.msrb.mxu0 %v1514_v63 }
 0xad3   : > { %1800 = vmatmul.msk.f32.vlgmr.msrb.gmra.mxu0 %vm445_vm2, %v2082_v16 }
 0xadb   : > { %1801 = vmatmul.msk.f32.gmra.mxu0 %vm445_vm2, %v2089_v17 }
 0xae3   : > { %1802 = vmatmul.msk.f32.gmra.mxu0 %vm445_vm2, %v2096_v18  ;;  %v1570_v18 = vld [vmem:[%s2299_s9] sm:$0x3f] }
 0xaeb   : > { %1803 = vmatmul.msk.f32.gmra.mxu0 %vm445_vm2, %v1521_v0 }
 0xb50   : > { %v1554_v37 = vpop.f32.mrf.mxu0 }
 0xb51   : > { %v1566_v17 = vmax.f32 %v1554_v37, 0.0 }
 0xb58   : > { %v1557_v38 = vpop.f32.mrf.mxu0 }
 0xb59   : > { %v1567_v16 = vmax.f32 %v1557_v38, 0.0 }
 0xb60   : > { %v1560_v3 = vpop.f32.mrf.mxu0 }
 0xb61   : > { %v1568_v41 = vmax.f32 %v1560_v3, 0.0 }
 0xb68   : > { %v1563_v39 = vpop.f32.mrf.mxu0 }
 0xb69   : > { %v1569_v40 = vmax.f32 %v1563_v39, 0.0 }
 0xb6b   : > { %1804 = vmatpush.msk.msra.mxu3 %vm404_vm0, %v1569_v40 }
 0xb6d   : > { %1590 = vmatpush.msra.mxu3 %v1568_v41 }
 0xb6f   : > { %1591 = vmatpush.msra.mxu3 %v1567_v16 }
 0xb71   : > { %1592 = vmatpush.msra.mxu3 %v1566_v17 }
 0xb72   : > { %1805 = vmatmul.msk.f32.vlgmr.msra.gmra.mxu3 %vm445_vm2, %v1570_v18 }
 0xbf5   : > { %v1594_v45 = vpop.f32.mrf.mxu3 }
 0xbf6   : > { %v1806_v46 = vmul.f32 -1.442695, %v1594_v45 }
 0xbf8   : > { %1827 = vpow2.f32 %v1806_v46 }
 0xbfe   : > { %v1828_v47 = vpop.eup %1827 }
 0xbff   : > { %v1600_v48 = vadd.f32 1.0, %v1828_v47 }
 0xc01   : > { %1829 = vrcp.f32 %v1600_v48  ;;  %v1612_v52 = vand.u32 2147483648, %v1600_v48  ;;  %v1610_v54 = vand.u32 2147483647, %v1600_v48  ;;  %vm1606_vm14 = vweird.f32 %v1600_v48 }
 0xc03   : > { %v1613_v56 = vor.u32 1.1754944e-38, %v1612_v52  ;;  %vm1611_vm0 = vcmp.eq.f32.partialorder %v1610_v54, 8.507059e+37 }
 0xc07   : > { %v1830_v49 = vpop.eup %1829 }
 0xc08   : > { %v1602_v50 = vmul.f32 %v1830_v49, %v1600_v48  ;;  %vm1607_vm13 = vweird.f32 %v1830_v49 }
 0xc09   : > { %vm1608_vm15 = vmor %vm1606_vm14, %vm1607_vm13 }
 0xc0a   : > { %v1603_v51 = vsub.f32 1.0, %v1602_v50 }
 0xc0c   : > { %v1604_v53 = vmul.f32 %v1830_v49, %v1603_v51 }
 0xc0e   : > { %v1605_v55 = vadd.f32 %v1830_v49, %v1604_v53 }
 0xc10   : > { %v1609_v57 = vsel %vm1608_vm15, %v1830_v49, %v1605_v55 }
 0xc11   : > { %v1614_v58 = vsel %vm1611_vm0, %v1613_v56, %v1609_v57 }
 0xc12   : > { %1616 = vst [vmem:[%s2126_s24 + $0x10] sm:$0x3f] %v1614_v58 }
 0xc13 PF: > { %s20_s13 = sadd.s32 1, %s1837_s13  }
 0xc14   : > { %p17_p4 = scmp.ge.s32.totalorder %s20_s13, 4  }
 0xc16   :  { %19 = sbr.rel (!%p17_p4) target bundleno = 1 (0x1), region = 93 }

</bundles_post_ra>
